<compile_context>
chip_gen: v7x
topology: tpu7x:2x2x1
jax: 0.10.0
libtpu: 0.0.40
codegen_flags: <defaults>
</compile_context>

<pallas_src>
import jax
import jax.numpy as jnp
from jax.experimental import pallas as pl
from jax.experimental.pallas import tpu as pltpu

HIDDEN1 = 128
HIDDEN2 = 256
ACTION_SIZE = 4
MAX_TB = 2048  # per-tile batch cap; keeps VMEM comfortable even on v7x (64 MiB)


def dqn_kernel(x_ref, w1_ref, b1_ref, w2_ref, b2_ref,
               w3_ref, b3_ref, w4_ref, b4_ref, out_ref):
    # x arrives in f32; cast to bf16 in-kernel (saves a separate wrapper-side
    # HBM pass).  Matmuls: bf16 operands, f32 MXU accumulation.  Epilogue
    # (bias-add + ReLU) stays f32 for v5e's f32-only VPU.
    x = x_ref[...].astype(jnp.bfloat16)
    h = jnp.dot(x, w1_ref[...], preferred_element_type=jnp.float32)
    h = jnp.maximum(h + b1_ref[...], 0.0)
    h = jnp.dot(h.astype(jnp.bfloat16), w2_ref[...],
                preferred_element_type=jnp.float32)
    h = jnp.maximum(h + b2_ref[...], 0.0)
    h = jnp.dot(h.astype(jnp.bfloat16), w3_ref[...],
                preferred_element_type=jnp.float32)
    h = jnp.maximum(h + b3_ref[...], 0.0)
    o = jnp.dot(h.astype(jnp.bfloat16), w4_ref[...],
                preferred_element_type=jnp.float32)
    out_ref[...] = (o + b4_ref[...]).astype(out_ref.dtype)


def init_linear(key, in_features, out_features):
    """Deterministic init mimicking torch.nn.Linear (uniform +/- 1/sqrt(fan_in)).
    Returns W already transposed to (in, out) and bias as (1, out), in f32."""
    kw, kb = jax.random.split(key)
    bound = 1.0 / jnp.sqrt(jnp.float32(in_features))
    w = jax.random.uniform(kw, (in_features, out_features),
                           dtype=jnp.float32, minval=-bound, maxval=bound)
    b = jax.random.uniform(kb, (1, out_features),
                           dtype=jnp.float32, minval=-bound, maxval=bound)
    return w, b


def prep_params(params):
    """bf16 matmul operands (weights); biases stay f32 for the f32 epilogue."""
    return tuple((w.astype(jnp.bfloat16), b.astype(jnp.float32))
                 for (w, b) in params)


def _round_up(n, m):
    return ((n + m - 1) // m) * m


def _choose_tb(batch):
    """Batch tile: >= 2 balanced grid steps for non-tiny batches (v7x megacore),
    capped at MAX_TB rows/tile, rounded to 16 rows (bf16 sublane packing)."""
    half = _round_up(max(pl.cdiv(batch, 2), 1), 16)
    return max(16, min(MAX_TB, half))


@jax.jit
def dqn_forward(x, params_bf16):
    """x: (batch, input_size) f32. params_bf16: output of prep_params."""
    (w1, b1), (w2, b2), (w3, b3), (w4, b4) = params_bf16
    batch, in_f = x.shape
    out_f = w4.shape[1]

    tb = _choose_tb(batch)
    grid = (pl.cdiv(batch, tb),)  # ragged last tile: OOB rows dropped on writeback

    resident = lambda arr: pl.BlockSpec(arr.shape, lambda i: (0, 0))

    flops = 2 * batch * (in_f * HIDDEN1 + HIDDEN1 * HIDDEN2
                         + HIDDEN2 * HIDDEN1 + HIDDEN1 * out_f)
    bytes_accessed = (batch * (in_f * 4 + out_f * 4)                   # x f32 in, out f32
                      + 2 * (in_f * HIDDEN1 + HIDDEN1 * HIDDEN2
                             + HIDDEN2 * HIDDEN1 + HIDDEN1 * out_f)    # bf16 weights
                      + 4 * (HIDDEN1 + HIDDEN2 + HIDDEN1 + out_f))     # f32 biases

    out_flat = pl.pallas_call(
        dqn_kernel,
        out_shape=jax.ShapeDtypeStruct((batch, out_f), jnp.float32),
        grid=grid,
        in_specs=[
            pl.BlockSpec((tb, in_f), lambda i: (i, 0)),   # x: tiled over batch
            resident(w1), resident(b1),                   # weights/biases stay
            resident(w2), resident(b2),                   # VMEM-resident across
            resident(w3), resident(b3),                   # the whole grid
            resident(w4), resident(b4),
        ],
        out_specs=pl.BlockSpec((tb, out_f), lambda i: (i, 0)),
        compiler_params=pltpu.CompilerParams(
            dimension_semantics=("parallel",)),
        cost_estimate=pl.CostEstimate(flops=flops, transcendentals=0,
                                      bytes_accessed=bytes_accessed),
    )(x, w1, b1, w2, b2, w3, b3, w4, b4)

    # output.view(-1, action_size, action_size)
    return out_flat.reshape(-1, ACTION_SIZE, ACTION_SIZE)


def reference_forward(x, params_bf16):
    """Pure-jnp reference with the same dtype policy as the kernel."""
    (w1, b1), (w2, b2), (w3, b3), (w4, b4) = params_bf16
    h = jnp.dot(x.astype(jnp.bfloat16), w1, preferred_element_type=jnp.float32)
    h = jnp.maximum(h + b1, 0.0)
    h = jnp.dot(h.astype(jnp.bfloat16), w2, preferred_element_type=jnp.float32)
    h = jnp.maximum(h + b2, 0.0)
    h = jnp.dot(h.astype(jnp.bfloat16), w3, preferred_element_type=jnp.float32)
    h = jnp.maximum(h + b3, 0.0)
    o = jnp.dot(h.astype(jnp.bfloat16), w4, preferred_element_type=jnp.float32)
    o = o + b4
    return o.reshape(-1, ACTION_SIZE, ACTION_SIZE)


if __name__ == "__main__":
    # Small shapes consistent with the module: output_size = 4*4 = 16 so that
    # .view(-1, 4, 4) keeps the batch dimension.
    input_size = 32
    output_size = ACTION_SIZE * ACTION_SIZE  # 16

    key = jax.random.PRNGKey(0)
    kx1, kx2, k1, k2, k3, k4 = jax.random.split(key, 6)

    params_f32 = (
        init_linear(k1, input_size, HIDDEN1),
        init_linear(k2, HIDDEN1, HIDDEN2),
        init_linear(k3, HIDDEN2, HIDDEN1),
        init_linear(k4, HIDDEN1, output_size),
    )
    params = prep_params(params_f32)

    # Two batch sizes: tiny single-tile path, and a non-multiple-of-tile batch
    # that exercises the multi-tile grid with a ragged last tile.
    for kx, batch in ((kx1, 8), (kx2, 200)):
        x = jax.random.normal(kx, (batch, input_size), dtype=jnp.float32)
        out = jax.block_until_ready(dqn_forward(x, params))
        ref = reference_forward(x, params)
        assert out.shape == (batch, ACTION_SIZE, ACTION_SIZE), out.shape
        assert jnp.allclose(out, ref, atol=1e-2, rtol=1e-2), \
            f"mismatch vs reference at batch={batch}"

    # TODO(synk): optimizer (Adam), SmoothL1Loss, save/load from the PyTorch
    # module are training and checkpoint utilities, not part of the forward
    # pass; not translated.

    print("KERNEL_OK")
</pallas_src>

<mosaic_0001>
module attributes {stable_mosaic.version = 11 : i64} {
  func.func @dqn_kernel(%arg0: i32, %arg1: memref<16x32xf32, #tpu.memory_space<vmem>>, %arg2: memref<32x128xbf16, #tpu.memory_space<vmem>>, %arg3: memref<1x128xf32, #tpu.memory_space<vmem>>, %arg4: memref<128x256xbf16, #tpu.memory_space<vmem>>, %arg5: memref<1x256xf32, #tpu.memory_space<vmem>>, %arg6: memref<256x128xbf16, #tpu.memory_space<vmem>>, %arg7: memref<1x128xf32, #tpu.memory_space<vmem>>, %arg8: memref<128x16xbf16, #tpu.memory_space<vmem>>, %arg9: memref<1x16xf32, #tpu.memory_space<vmem>>, %arg10: memref<16x16xf32, #tpu.memory_space<vmem>>) attributes {dimension_semantics = [#tpu.dimension_semantics<parallel>], iteration_bounds = array<i64: 1>, scalar_prefetch = 0 : i64, scratch_operands = 0 : i64, tpu.core_type = #tpu.core_type<tc>, window_params = [{transform_indices = @transform_0, window_bounds = array<i64: 16, 32>}, {pipeline_mode = #tpu.pipeline_mode<synchronous>, transform_indices = @transform_1, window_bounds = array<i64: 32, 128>}, {pipeline_mode = #tpu.pipeline_mode<synchronous>, transform_indices = @transform_2, window_bounds = array<i64: 1, 128>}, {pipeline_mode = #tpu.pipeline_mode<synchronous>, transform_indices = @transform_3, window_bounds = array<i64: 128, 256>}, {pipeline_mode = #tpu.pipeline_mode<synchronous>, transform_indices = @transform_4, window_bounds = array<i64: 1, 256>}, {pipeline_mode = #tpu.pipeline_mode<synchronous>, transform_indices = @transform_5, window_bounds = array<i64: 256, 128>}, {pipeline_mode = #tpu.pipeline_mode<synchronous>, transform_indices = @transform_6, window_bounds = array<i64: 1, 128>}, {pipeline_mode = #tpu.pipeline_mode<synchronous>, transform_indices = @transform_7, window_bounds = array<i64: 128, 16>}, {pipeline_mode = #tpu.pipeline_mode<synchronous>, transform_indices = @transform_8, window_bounds = array<i64: 1, 16>}, {transform_indices = @transform_9, window_bounds = array<i64: 16, 16>}]} {
    %c0 = arith.constant 0 : index
    %c0_0 = arith.constant 0 : index
    %0 = vector.load %arg1[%c0, %c0_0] : memref<16x32xf32, #tpu.memory_space<vmem>>, vector<16x32xf32>
    %1 = arith.truncf %0 : vector<16x32xf32> to vector<16x32xbf16>
    %c0_1 = arith.constant 0 : index
    %c0_2 = arith.constant 0 : index
    %2 = vector.load %arg2[%c0_1, %c0_2] : memref<32x128xbf16, #tpu.memory_space<vmem>>, vector<32x128xbf16>
    %cst = arith.constant dense<0.000000e+00> : vector<16x128xf32>
    %3 = tpu.matmul %1, %2, %cst {dimension_numbers = #tpu.dot_dimension_numbers<[1], [0], [0], [1], [0, 0, 1, 1], [], []>} : vector<16x32xbf16>, vector<32x128xbf16>, vector<16x128xf32> -> vector<16x128xf32>
    %c0_3 = arith.constant 0 : index
    %c0_4 = arith.constant 0 : index
    %4 = vector.load %arg3[%c0_3, %c0_4] : memref<1x128xf32, #tpu.memory_space<vmem>>, vector<1x128xf32>
    %5 = vector.broadcast %4 : vector<1x128xf32> to vector<16x128xf32>
    %6 = arith.addf %3, %5 : vector<16x128xf32>
    %cst_5 = arith.constant 0.000000e+00 : f32
    %7 = vector.broadcast %cst_5 : f32 to vector<16x128xf32>
    %8 = arith.maximumf %6, %7 : vector<16x128xf32>
    %9 = arith.truncf %8 : vector<16x128xf32> to vector<16x128xbf16>
    %c0_6 = arith.constant 0 : index
    %c0_7 = arith.constant 0 : index
    %10 = vector.load %arg4[%c0_6, %c0_7] : memref<128x256xbf16, #tpu.memory_space<vmem>>, vector<128x256xbf16>
    %cst_8 = arith.constant dense<0.000000e+00> : vector<16x256xf32>
    %11 = tpu.matmul %9, %10, %cst_8 {dimension_numbers = #tpu.dot_dimension_numbers<[1], [0], [0], [1], [0, 0, 1, 1], [], []>} : vector<16x128xbf16>, vector<128x256xbf16>, vector<16x256xf32> -> vector<16x256xf32>
    %c0_9 = arith.constant 0 : index
    %c0_10 = arith.constant 0 : index
    %12 = vector.load %arg5[%c0_9, %c0_10] : memref<1x256xf32, #tpu.memory_space<vmem>>, vector<1x256xf32>
    %13 = vector.broadcast %12 : vector<1x256xf32> to vector<16x256xf32>
    %14 = arith.addf %11, %13 : vector<16x256xf32>
    %cst_11 = arith.constant 0.000000e+00 : f32
    %15 = vector.broadcast %cst_11 : f32 to vector<16x256xf32>
    %16 = arith.maximumf %14, %15 : vector<16x256xf32>
    %17 = arith.truncf %16 : vector<16x256xf32> to vector<16x256xbf16>
    %c0_12 = arith.constant 0 : index
    %c0_13 = arith.constant 0 : index
    %18 = vector.load %arg6[%c0_12, %c0_13] : memref<256x128xbf16, #tpu.memory_space<vmem>>, vector<256x128xbf16>
    %cst_14 = arith.constant dense<0.000000e+00> : vector<16x128xf32>
    %19 = tpu.matmul %17, %18, %cst_14 {dimension_numbers = #tpu.dot_dimension_numbers<[1], [0], [0], [1], [0, 0, 1, 1], [], []>} : vector<16x256xbf16>, vector<256x128xbf16>, vector<16x128xf32> -> vector<16x128xf32>
    %c0_15 = arith.constant 0 : index
    %c0_16 = arith.constant 0 : index
    %20 = vector.load %arg7[%c0_15, %c0_16] : memref<1x128xf32, #tpu.memory_space<vmem>>, vector<1x128xf32>
    %21 = vector.broadcast %20 : vector<1x128xf32> to vector<16x128xf32>
    %22 = arith.addf %19, %21 : vector<16x128xf32>
    %cst_17 = arith.constant 0.000000e+00 : f32
    %23 = vector.broadcast %cst_17 : f32 to vector<16x128xf32>
    %24 = arith.maximumf %22, %23 : vector<16x128xf32>
    %25 = arith.truncf %24 : vector<16x128xf32> to vector<16x128xbf16>
    %c0_18 = arith.constant 0 : index
    %c0_19 = arith.constant 0 : index
    %26 = vector.load %arg8[%c0_18, %c0_19] : memref<128x16xbf16, #tpu.memory_space<vmem>>, vector<128x16xbf16>
    %cst_20 = arith.constant dense<0.000000e+00> : vector<16x16xf32>
    %27 = tpu.matmul %25, %26, %cst_20 {dimension_numbers = #tpu.dot_dimension_numbers<[1], [0], [0], [1], [0, 0, 1, 1], [], []>} : vector<16x128xbf16>, vector<128x16xbf16>, vector<16x16xf32> -> vector<16x16xf32>
    %c0_21 = arith.constant 0 : index
    %c0_22 = arith.constant 0 : index
    %28 = vector.load %arg9[%c0_21, %c0_22] : memref<1x16xf32, #tpu.memory_space<vmem>>, vector<1x16xf32>
    %29 = vector.broadcast %28 : vector<1x16xf32> to vector<16x16xf32>
    %30 = arith.addf %27, %29 : vector<16x16xf32>
    %c0_23 = arith.constant 0 : index
    %c0_24 = arith.constant 0 : index
    %31 = vector.load %arg10[%c0_23, %c0_24] : memref<16x16xf32, #tpu.memory_space<vmem>>, vector<16x16xf32>
    tpu.vector_store %arg10[%c0_23, %c0_24], %30 {strides = array<i32>} : memref<16x16xf32, #tpu.memory_space<vmem>>, vector<16x16xf32>,
    return
  }
  func.func @transform_0(%arg0: i32) -> (i32, i32) {
    %c0_i32 = arith.constant 0 : i32
    %c0_i32_0 = arith.constant 0 : i32
    return %arg0, %c0_i32 : i32, i32
  }
  func.func @transform_1(%arg0: i32) -> (i32, i32) {
    %c0_i32 = arith.constant 0 : i32
    %c0_i32_0 = arith.constant 0 : i32
    %c0_i32_1 = arith.constant 0 : i32
    return %c0_i32, %c0_i32_0 : i32, i32
  }
  func.func @transform_2(%arg0: i32) -> (i32, i32) {
    %c0_i32 = arith.constant 0 : i32
    %c0_i32_0 = arith.constant 0 : i32
    %c0_i32_1 = arith.constant 0 : i32
    return %c0_i32, %c0_i32_0 : i32, i32
  }
  func.func @transform_3(%arg0: i32) -> (i32, i32) {
    %c0_i32 = arith.constant 0 : i32
    %c0_i32_0 = arith.constant 0 : i32
    %c0_i32_1 = arith.constant 0 : i32
    return %c0_i32, %c0_i32_0 : i32, i32
  }
  func.func @transform_4(%arg0: i32) -> (i32, i32) {
    %c0_i32 = arith.constant 0 : i32
    %c0_i32_0 = arith.constant 0 : i32
    %c0_i32_1 = arith.constant 0 : i32
    return %c0_i32, %c0_i32_0 : i32, i32
  }
  func.func @transform_5(%arg0: i32) -> (i32, i32) {
    %c0_i32 = arith.constant 0 : i32
    %c0_i32_0 = arith.constant 0 : i32
    %c0_i32_1 = arith.constant 0 : i32
    return %c0_i32, %c0_i32_0 : i32, i32
  }
  func.func @transform_6(%arg0: i32) -> (i32, i32) {
    %c0_i32 = arith.constant 0 : i32
    %c0_i32_0 = arith.constant 0 : i32
    %c0_i32_1 = arith.constant 0 : i32
    return %c0_i32, %c0_i32_0 : i32, i32
  }
  func.func @transform_7(%arg0: i32) -> (i32, i32) {
    %c0_i32 = arith.constant 0 : i32
    %c0_i32_0 = arith.constant 0 : i32
    %c0_i32_1 = arith.constant 0 : i32
    return %c0_i32, %c0_i32_0 : i32, i32
  }
  func.func @transform_8(%arg0: i32) -> (i32, i32) {
    %c0_i32 = arith.constant 0 : i32
    %c0_i32_0 = arith.constant 0 : i32
    %c0_i32_1 = arith.constant 0 : i32
    return %c0_i32, %c0_i32_0 : i32, i32
  }
  func.func @transform_9(%arg0: i32) -> (i32, i32) {
    %c0_i32 = arith.constant 0 : i32
    %c0_i32_0 = arith.constant 0 : i32
    return %arg0, %c0_i32 : i32, i32
  }
}

</mosaic_0001>

<bundles_post_ra>
// kernel: dqn_forward.1
= control target key start
LH: loop header
LB: loop body
LE: loop exit
PB: predicated region body
PF: predicated region fallthrough
CT: control target
= control target key end

     0   :  { %14 = vsyncpa [#allocation3], 0  ;;  %s991_s0 = inlined_call_operand.vmem [shape: f32[8,32], index: 0, kind: input, shape index: {}]   ;;  %s992_s1 = inlined_call_operand.vmem [shape: bf16[32,128], index: 1, kind: input, shape index: {}]   ;;  %s993_s2 = inlined_call_operand.vmem [shape: f32[1,128], index: 2, kind: input, shape index: {}]   ;;  %s994_s3 = inlined_call_operand.hbm [shape: bf16[128,256], index: 3, kind: input, shape index: {}]   ;;  %s995_s4 = inlined_call_operand.vmem [shape: f32[1,256], index: 4, kind: input, shape index: {}]   ;;  %s996_s5 = inlined_call_operand.hbm [shape: bf16[256,128], index: 5, kind: input, shape index: {}]   ;;  %s997_s6 = inlined_call_operand.vmem [shape: f32[1,128], index: 6, kind: input, shape index: {}]   ;;  %s998_s7 = inlined_call_operand.vmem [shape: bf16[128,16], index: 7, kind: input, shape index: {}]   ;;  %s999_s8 = inlined_call_operand.vmem [shape: f32[1,16], index: 8, kind: input, shape index: {}]   ;;  %s1000_s9 = inlined_call_operand.vmem [shape: f32[8,16], index: 9, kind: output, shape index: {}]  }
   0x1   :  { %15 = vsyncpa [#allocation5], 0  ;;  %s843_s30 = smov [#allocation2]   ;;  %s795_s13 = scalar_lea.hbm %s994_s3, 2048 }
   0x2   :  { %s27_s10 = sshll.u32 %s843_s30, 4  ;;  %p796_p0 = scmp.ne.s32.totalorder %s994_s3, %s795_s13  ;;  %s28_s10 = int_to_ptr.vmem [resolvable:$true] %s27_s10 }
   0x3   :  { %p799_p1 = scmp.lt.u32.totalorder %s795_s13, %s994_s3 }
   0x5   :  { %p801_p2 = pnand %p799_p1, %p796_p0 }
   0x7   :  { %804 = shalt.err (!%p801_p2)
}
   0x8   :  { %s805_s18 = scalar_lea.vmem %s28_s10, 2048  ;;  %p810_p4 = scmp.lt.s32.totalorder %s28_s10, %s28_s10 }
   0x9   :  { %p806_p3 = scmp.ne.s32.totalorder %s28_s10, %s805_s18  ;;  %p811_p5 = scmp.lt.s32.totalorder %s805_s18, %s805_s18 }
   0xb   :  { %p812_p6 = por %p811_p5, %p810_p4 }
   0xd   :  { %p813_p7 = pnand %p812_p6, %p806_p3 }
   0xf   :  { %816 = shalt.err (!%p813_p7)
}
  0x10   :  { %s844_s19 = smov 128   ;;  %s845_s20 = smov 8  }
  0x11   :  { %33 = dma.hbm_to_vmem [thread:$0]  %s994_s3, 2048, %s28_s10, [#allocation3], %s844_s19, %s844_s19, %s845_s20  }
  0x12   :  { %s846_s23 = smov [#allocation4]   ;;  %s817_s27 = scalar_lea.hbm %s996_s5, 2048 }
  0x13   :  { %s41_s24 = sshll.u32 %s846_s23, 4  ;;  %p818_p8 = scmp.ne.s32.totalorder %s996_s5, %s817_s27  ;;  %s42_s24 = int_to_ptr.vmem [resolvable:$true] %s41_s24 }
  0x14   :  { %p821_p9 = scmp.lt.u32.totalorder %s817_s27, %s996_s5 }
  0x16   :  { %p823_p10 = pnand %p821_p9, %p818_p8 }
  0x18   :  { %826 = shalt.err (!%p823_p10)
}
  0x19   :  { %s827_s12 = scalar_lea.vmem %s42_s24, 2048  ;;  %p832_p12 = scmp.lt.s32.totalorder %s42_s24, %s42_s24 }
  0x1a   :  { %p828_p11 = scmp.ne.s32.totalorder %s42_s24, %s827_s12  ;;  %p833_p13 = scmp.lt.s32.totalorder %s827_s12, %s827_s12 }
  0x1c   :  { %p834_p0 = por %p833_p13, %p832_p12 }
  0x1e   :  { %p835_p1 = pnand %p834_p0, %p828_p11 }
  0x20   :  { %838 = shalt.err (!%p835_p1)
}
  0x21   :  { %s847_s3 = smov 64   ;;  %s848_s10 = smov 4  }
  0x22   :  { %47 = dma.hbm_to_vmem [thread:$0]  %s996_s5, 2048, %s42_s24, [#allocation5], %s847_s3, %s847_s3, %s848_s10  }
  0x23   :  { %839 = dma.done.wait [#allocation3], 2048  }
  0x24   :  { %840 = vsyncadd [#allocation3], 4294965248 }
  0x25   :  { %841 = dma.done.wait [#allocation5], 2048  }
  0x26   :  { %842 = vsyncadd [#allocation5], 4294965248  ;;  %v849_v0 = vmov 0.0   ;;  %vm850_vm0 = vmmov 0   ;;  %v745_v1 = vld [vmem:[%s992_s1] sm:$0xff]   ;;  %v746_v2 = vld [vmem:[%s992_s1 + $0x8] sm:$0xff]   ;;  %v153_v54 = vlaneseq }
  0x27   :  { %708 = vmatprep.subr.bf16.mxu0 %v849_v0  ;;  %712 = vmatprep.mubr.msk.bf16.mxu0 %vm850_vm0, %v849_v0  ;;  %v61_v3 = vld [vmem:[%s991_s0] sm:$0xff]  ;;  %v62_v4 = vld [vmem:[%s991_s0 + $0x8] sm:$0xff]  ;;  %v750_v7 = vld [vmem:[#allocation2 + $0x14] ss:$8 sps:$4 sm:$0xff]   ;;  %vm87_vm1 = vcmask 261120   ;;  %v851_v22 = vmov 0  }
  0x28   :  { %709 = vmatpush3.bf16.msra.mxu0 %v745_v1  ;;  %v747_v5 = vld [vmem:[#allocation2 + $0x4] ss:$8 sps:$4 sm:$0xff]   ;;  %v749_v6 = vld [vmem:[#allocation2] ss:$8 sps:$4 sm:$0xff]   ;;  %v63_v8 = vpack.c.bf16 %v62_v4, %v61_v3  ;;  %v752_v9 = vld [vmem:[#allocation2 + $0x10] ss:$8 sps:$4 sm:$0xff]   ;;  %275 = vmatprep.mubr.bf16.mxu1 %v851_v22 }
  0x29   :  { %710 = vmatprep.subr.bf16.mxu0 %v849_v0  ;;  %243 = vmatprep.subr.bf16.mxu1 %v747_v5  ;;  %v753_v10 = vld [vmem:[#allocation2 + $0x24] ss:$8 sps:$4 sm:$0xff]   ;;  %v755_v11 = vld [vmem:[#allocation2 + $0x20] ss:$8 sps:$4 sm:$0xff]   ;;  %v756_v12 = vld [vmem:[#allocation2 + $0x34] ss:$8 sps:$4 sm:$0xff]  }
  0x2a   :  { %244 = vmatpush1.bf16.msra.mxu1 %v749_v6  ;;  %v758_v13 = vld [vmem:[#allocation2 + $0x30] ss:$8 sps:$4 sm:$0xff]   ;;  %v759_v14 = vld [vmem:[#allocation2 + $0x44] ss:$8 sps:$4 sm:$0xff]   ;;  %v761_v15 = vld [vmem:[#allocation2 + $0x40] ss:$8 sps:$4 sm:$0xff]  }
  0x2b   :  { %245 = vmatprep.subr.bf16.mxu1 %v750_v7  ;;  %v762_v16 = vld [vmem:[#allocation2 + $0x54] ss:$8 sps:$4 sm:$0xff]   ;;  %v764_v17 = vld [vmem:[#allocation2 + $0x50] ss:$8 sps:$4 sm:$0xff]   ;;  %v765_v18 = vld [vmem:[#allocation2 + $0x64] ss:$8 sps:$4 sm:$0xff]  }
  0x2c   :  { %711 = vmatpush3.bf16.msra.mxu0 %v746_v2  ;;  %v767_v19 = vld [vmem:[#allocation2 + $0x60] ss:$8 sps:$4 sm:$0xff]   ;;  %v768_v20 = vld [vmem:[#allocation2 + $0x74] ss:$8 sps:$4 sm:$0xff]   ;;  %v770_v21 = vld [vmem:[#allocation2 + $0x70] ss:$8 sps:$4 sm:$0xff]  }
  0x2d   :  { %v771_v23 = vld [vmem:[#allocation4 + $0x40] sm:$0xff]   ;;  %v773_v25 = vld [vmem:[#allocation4 + $0x48] sm:$0xff]   ;;  %v775_v27 = vld [vmem:[#allocation4 + $0x50] sm:$0xff]   ;;  %v154_v55 = vshrl.u32 %v153_v54, 7  ;;  %vm583_vm2 = vcmask 130048  }
  0x2e   :  { %246 = vmatpush1.bf16.msra.mxu1 %v752_v9  ;;  %v772_v24 = vld [vmem:[#allocation4] sm:$0xff]   ;;  %677 = vmatprep.subr.bf16.mxu0 %v771_v23  ;;  %v774_v26 = vld [vmem:[#allocation4 + $0x8] sm:$0xff]   ;;  %v776_v28 = vld [vmem:[#allocation4 + $0x10] sm:$0xff]  }
  0x2f   :  { %713 = vmatmul.mubr.msk.bf16.vlgmr.msra.gmra.mrb[0].mxu0 %vm87_vm1, %v63_v8  ;;  %247 = vmatprep.subr.bf16.mxu1 %v753_v10  ;;  %v777_v29 = vld [vmem:[#allocation4 + $0x58] sm:$0xff]   ;;  %v779_v31 = vld [vmem:[#allocation4 + $0x60] sm:$0xff]   ;;  %v781_v33 = vld [vmem:[#allocation4 + $0x68] sm:$0xff]   ;;  %v155_v56 = vsub.s32 0, %v154_v55  ;;  %v159_v58 = vsub.s32 1, %v154_v55 }
  0x30   :  { %678 = vmatpush3.bf16.msra.mxu0 %v772_v24  ;;  %v778_v30 = vld [vmem:[#allocation4 + $0x18] sm:$0xff]   ;;  %v780_v32 = vld [vmem:[#allocation4 + $0x20] sm:$0xff]   ;;  %v782_v44 = vld [vmem:[#allocation4 + $0x28] sm:$0xff]  }
  0x31   :  { %679 = vmatprep.subr.bf16.mxu0 %v773_v25  ;;  %v628_v34 = vld [vmem:[%s993_s2] ss:$0 sm:$0xff]  ;;  %v783_v45 = vld [vmem:[#allocation4 + $0x70] sm:$0xff]   ;;  %v785_v47 = vld [vmem:[#allocation4 + $0x78] sm:$0xff]  }
  0x32   :  { %248 = vmatpush1.bf16.msra.mxu1 %v755_v11  ;;  %v784_v46 = vld [vmem:[#allocation4 + $0x30] sm:$0xff]   ;;  %v786_v48 = vld [vmem:[#allocation4 + $0x38] sm:$0xff]   ;;  %v787_v49 = vld [vmem:[%s998_s7] sm:$0xff]  }
  0x33   :  { %249 = vmatprep.subr.bf16.mxu1 %v756_v12  ;;  %v788_v50 = vld [vmem:[%s998_s7 + $0x8] sm:$0xff]   ;;  %v789_v51 = vld [vmem:[%s998_s7 + $0x10] sm:$0xff]   ;;  %v790_v52 = vld [vmem:[%s998_s7 + $0x18] sm:$0xff]  }
  0x34   :  { %680 = vmatpush3.bf16.msra.mxu0 %v774_v26  ;;  %v791_v53 = vld [vmem:[%s998_s7 + $0x20] sm:$0xff]   ;;  %v792_v12 = vld [vmem:[%s998_s7 + $0x28] sm:$0xff]  }
  0x35   :  { %681 = vmatprep.subr.bf16.mxu0 %v775_v27  ;;  %v151_v57 = vld [vmem:[%s995_s4] sm:$0x3] }
  0x36   :  { %250 = vmatpush1.bf16.msra.mxu1 %v758_v13  ;;  %v156_v59 = vrot.slane %v151_v57, %v155_v56  ;;  %v160_v60 = vrot.slane %v151_v57, %v159_v58  ;;  %v793_v13 = vld [vmem:[%s998_s7 + $0x30] sm:$0xff]   ;;  %v665_v26 = vld [vmem:[%s999_s8] ss:$0 sm:$0xff] }
  0x37   :  { %251 = vmatprep.subr.bf16.mxu1 %v759_v14  ;;  %v794_v14 = vld [vmem:[%s998_s7 + $0x38] sm:$0xff]  }
  0x38   :  { %682 = vmatpush3.bf16.msra.mxu0 %v776_v28 }
  0x39   :  { %683 = vmatprep.subr.bf16.mxu0 %v777_v29 }
  0x3a   :  { %252 = vmatpush1.bf16.msra.mxu1 %v761_v15 }
  0x3b   :  { %253 = vmatprep.subr.bf16.mxu1 %v762_v16  ;;  %v648_v16 = vld [vmem:[%s997_s6] ss:$0 sm:$0xff] }
  0x3c   :  { %684 = vmatpush3.bf16.msra.mxu0 %v778_v30 }
  0x3d   :  { %685 = vmatprep.subr.bf16.mxu0 %v779_v31 }
  0x3e   :  { %254 = vmatpush1.bf16.msra.mxu1 %v764_v17 }
  0x3f   :  { %255 = vmatprep.subr.bf16.mxu1 %v765_v18 }
  0x40   :  { %686 = vmatpush3.bf16.msra.mxu0 %v780_v32 }
  0x41   :  { %687 = vmatprep.subr.bf16.mxu0 %v781_v33 }
  0x42   :  { %256 = vmatpush1.bf16.msra.mxu1 %v767_v19 }
  0x43   :  { %257 = vmatprep.subr.bf16.mxu1 %v768_v20 }
  0x44   :  { %688 = vmatpush3.bf16.msra.mxu0 %v782_v44 }
  0x45   :  { %689 = vmatprep.subr.bf16.mxu0 %v783_v45 }
  0x46   :  { %258 = vmatpush1.bf16.msra.mxu1 %v770_v21 }
  0x47   :  { %716 = vmatprep.subr.bf16.mxu1 %v849_v0 }
  0x48   :  { %690 = vmatpush3.bf16.msra.mxu0 %v784_v46 }
  0x49   :  { %691 = vmatprep.subr.bf16.mxu0 %v785_v47 }
  0x4c   :  { %692 = vmatpush3.bf16.msra.mxu0 %v786_v48 }
 0x102   :  { %v125_v35 = vpop.f32.mrb[0].mxu0 }
 0x103   :  { %v126_v36 = vadd.f32 %v628_v34, %v125_v35  ;;  %v714_v37 = vpop.f32.mrb[1].mxu0 }
 0x104   :  { %v128_v38 = vpop.f32.mrb[2].mxu0 }
 0x105   :  { %v129_v39 = vadd.f32 %v628_v34, %v128_v38  ;;  %v715_v40 = vpop.f32.mrb[3].mxu0  ;;  %v132_v41 = vmax.f32 %v126_v36, 0.0 }
 0x107   :  { %v133_v42 = vmax.f32 %v129_v39, 0.0 }
 0x109   :  { %v134_v43 = vpack.c.bf16 %v133_v42, %v132_v41 }
 0x10b   :  { %276 = vmatmul.mubr.bf16.vlgmr.msra.gmra.mrb[0].mxu1 %v134_v43 }
 0x10c   :  { %732 = vmatprep.mubr.msk.bf16.mxu1 %vm850_vm0, %v849_v0  ;;  %717 = vmatpush3.bf16.msra.mxu1 %v787_v49 }
 0x10d   :  { %718 = vmatprep.subr.bf16.mxu1 %v849_v0 }
 0x110   :  { %719 = vmatpush3.bf16.msra.mxu1 %v788_v50 }
 0x111   :  { %720 = vmatprep.subr.bf16.mxu1 %v849_v0 }
 0x114   :  { %721 = vmatpush3.bf16.msra.mxu1 %v789_v51 }
 0x115   :  { %722 = vmatprep.subr.bf16.mxu1 %v849_v0 }
 0x118   :  { %723 = vmatpush3.bf16.msra.mxu1 %v790_v52 }
 0x119   :  { %724 = vmatprep.subr.bf16.mxu1 %v849_v0 }
 0x11c   :  { %725 = vmatpush3.bf16.msra.mxu1 %v791_v53 }
 0x11d   :  { %726 = vmatprep.subr.bf16.mxu1 %v849_v0 }
 0x120   :  { %727 = vmatpush3.bf16.msra.mxu1 %v792_v12 }
 0x121   :  { %728 = vmatprep.subr.bf16.mxu1 %v849_v0 }
 0x124   :  { %729 = vmatpush3.bf16.msra.mxu1 %v793_v13 }
 0x125   :  { %730 = vmatprep.subr.bf16.mxu1 %v849_v0 }
 0x128   :  { %731 = vmatpush3.bf16.msra.mxu1 %v794_v14 }
 0x1de   :  { %v277_v61 = vpop.f32.mrb[0].mxu1 }
 0x1df   :  { %v278_v62 = vadd.f32 %v277_v61, %v156_v59  ;;  %v279_v63 = vpop.f32.mrb[1].mxu1 }
 0x1e0   :  { %v280_v1 = vadd.f32 %v279_v63, %v160_v60  ;;  %v281_v2 = vpop.f32.mrb[2].mxu1 }
 0x1e1   :  { %v282_v3 = vadd.f32 %v281_v2, %v156_v59  ;;  %v283_v4 = vpop.f32.mrb[3].mxu1  ;;  %v286_v6 = vmax.f32 %v278_v62, 0.0 }
 0x1e2   :  { %v284_v5 = vadd.f32 %v283_v4, %v160_v60  ;;  %v287_v8 = vmax.f32 %v280_v1, 0.0 }
 0x1e3   :  { %v288_v7 = vmax.f32 %v282_v3, 0.0 }
 0x1e4   :  { %v289_v9 = vmax.f32 %v284_v5, 0.0 }
 0x1e5   :  { %v290_v10 = vpack.c.bf16 %v288_v7, %v286_v6 }
 0x1e6   :  { %v291_v11 = vpack.c.bf16 %v289_v9, %v287_v8 }
 0x1e8   :  { %459 = vmatprep.mubr.bf16.mxu0 %v291_v11 }
 0x1e9   :  { %460 = vmatmul.mubr.bf16.vlgmr.msra.gmra.mrb[4].mxu0 %v290_v10 }
 0x2bc   :  { %v693_v15 = vpop.f32.mrb[4].mxu0 }
 0x2bd   :  { %v694_v17 = vpop.f32.mrb[5].mxu0 }
 0x2be   :  { %v695_v18 = vadd.f32 %v694_v17, %v693_v15  ;;  %v696_v19 = vpop.f32.mrb[6].mxu0 }
 0x2bf   :  { %v697_v20 = vpop.f32.mrb[7].mxu0 }
 0x2c0   :  { %v462_v21 = vadd.f32 %v695_v18, %v648_v16  ;;  %v698_v22 = vadd.f32 %v697_v20, %v696_v19 }
 0x2c2   :  { %v465_v23 = vadd.f32 %v698_v22, %v648_v16  ;;  %v468_v24 = vmax.f32 %v462_v21, 0.0 }
 0x2c4   :  { %v469_v25 = vmax.f32 %v465_v23, 0.0 }
 0x2c6   :  { %v470_v0 = vpack.c.bf16 %v469_v25, %v468_v24 }
 0x2c8   :  { %733 = vmatmul.mubr.bf16.vlgmr.msra.gmra.mrb[4].mxu1 %v470_v0 }
 0x39b   :  { %v576_v27 = vpop.f32.mrb[4].mxu1 }
 0x39c   :  { %v577_v28 = vadd.f32 %v665_v26, %v576_v27  ;;  %v734_v29 = vpop.f32.mrb[5].mxu1 }
 0x39d   :  { %v579_v30 = vpop.f32.mrb[6].mxu1 }
 0x39e   :  { %584 = vst.msk [vmem:[#allocation6] sm:$0xff] %vm583_vm2, %v577_v28  ;;  %v735_v31 = vpop.f32.mrb[7].mxu1 }
 0x3a5   :  { %v615_v32 = vld [vmem:[#allocation6] sm:$0xff] }
 0x3a6   :  { %616 = vst [vmem:[%s1000_s9] sm:$0xff] %v615_v32 }
 0x3a7   :  { %622 = vsyncpa [#allocation3], 1 }
 0x3a8   :  { %623 = vsyncpa [#allocation5], 1 }

</bundles_post_ra>
